<compile_context>
chip_gen: v7x
topology: tpu7x:2x2x1
jax: 0.10.0
libtpu: 0.0.40
codegen_flags: <defaults>
</compile_context>

<pallas_src>
import jax
import jax.numpy as jnp
from jax.experimental import pallas as pl
from jax.experimental.pallas import tpu as pltpu

# ---- model hyperparameters (from __init__ shapes; chosen small & TPU-aligned)
WORD_NUM = 64      # vocab.m_size
EMBED_DIM = 128    # opts.embed_size  (lane-aligned)
BATCH = 2
SEQ = 8
MAX_TOK_TILE = 256  # cap one-hot tile: TOK_TILE x V f32 stays tiny even on v7x


def embedding_gather_kernel(ids_ref, table_ref, out_ref):
    """One-hot MXU gather of one token tile.

    ids_ref   : VMEM [TOK_TILE, 1]          int32  (raw token ids)
    table_ref : VMEM [WORD_NUM, EMBED_DIM]  f32    (resident across all tiles)
    out_ref   : VMEM [TOK_TILE, EMBED_DIM]  f32
    """
    n_tok = ids_ref.shape[0]
    v = table_ref.shape[0]
    # Clamp inside the kernel (free VPU op); Pallas does no VMEM bounds checks,
    # and clamp-to-last-row matches jnp.take semantics for OOB ids.
    ids = jnp.clip(ids_ref[...], 0, v - 1)                       # (TOK_TILE, 1)
    vocab_iota = jax.lax.broadcasted_iota(jnp.int32, (n_tok, v), 1)
    one_hot = (vocab_iota == ids).astype(table_ref.dtype)        # (TOK_TILE, V)
    out_ref[...] = jnp.dot(
        one_hot, table_ref[...], preferred_element_type=jnp.float32
    ).astype(out_ref.dtype)                                      # lane-dense full-tile store


def embedding_lookup(ids_flat, table):
    """ids_flat: int [N]; table: f32 [V, D] -> f32 [N, D]."""
    n_tok = ids_flat.shape[0]
    v, d = table.shape

    tok_tile = n_tok if n_tok <= MAX_TOK_TILE else MAX_TOK_TILE
    n_pad = pl.cdiv(n_tok, tok_tile) * tok_tile

    ids_col = ids_flat.astype(jnp.int32).reshape(n_tok, 1)
    if n_pad != n_tok:
        # Pad only when the token count doesn't tile evenly; pad ids are 0 and
        # their rows are sliced away below.
        ids_col = jnp.pad(ids_col, ((0, n_pad - n_tok), (0, 0)))

    out = pl.pallas_call(
        embedding_gather_kernel,
        out_shape=jax.ShapeDtypeStruct((n_pad, d), table.dtype),
        grid=(n_pad // tok_tile,),
        in_specs=[
            pl.BlockSpec((tok_tile, 1), lambda i: (i, 0)),
            pl.BlockSpec((v, d), lambda i: (0, 0)),   # table stays VMEM-resident
        ],
        out_specs=pl.BlockSpec((tok_tile, d), lambda i: (i, 0)),
        compiler_params=pltpu.CompilerParams(
            dimension_semantics=("parallel",)),
    )(ids_col, table)

    if n_pad != n_tok:
        out = out[:n_tok]
    return out


def child_sum_tree_lstm_forward(token_ids, embed_table):
    """Mirrors self.embeddings(input); token_ids: int32 [batch, seq]."""
    b, s = token_ids.shape
    flat = token_ids.reshape(b * s)
    emb = embedding_lookup(flat, embed_table)
    return emb.reshape(b, s, EMBED_DIM)


if __name__ == "__main__":
    key = jax.random.PRNGKey(0)
    k_emb, k_ids = jax.random.split(key)

    # Deterministic parameter init (nn.Embedding default ~ N(0,1)).
    embed_table = jax.random.normal(k_emb, (WORD_NUM, EMBED_DIM), dtype=jnp.float32)
    token_ids = jax.random.randint(k_ids, (BATCH, SEQ), 0, WORD_NUM, dtype=jnp.int32)

    out = child_sum_tree_lstm_forward(token_ids, embed_table)
    out = jax.block_until_ready(out)

    # correctness check vs plain-JAX gather
    ref = jnp.take(embed_table, token_ids, axis=0)
    assert out.shape == (BATCH, SEQ, EMBED_DIM)
    assert jnp.allclose(out, ref), "embedding gather mismatch"

    print("KERNEL_OK")
</pallas_src>

<mosaic_0001>
module attributes {stable_mosaic.version = 11 : i64} {
  func.func @embedding_gather_kernel(%arg0: i32, %arg1: memref<16x1xi32, #tpu.memory_space<vmem>>, %arg2: memref<64x128xf32, #tpu.memory_space<vmem>>, %arg3: memref<16x128xf32, #tpu.memory_space<vmem>>) attributes {dimension_semantics = [#tpu.dimension_semantics<parallel>], iteration_bounds = array<i64: 1>, scalar_prefetch = 0 : i64, scratch_operands = 0 : i64, tpu.core_type = #tpu.core_type<tc>, window_params = [{transform_indices = @transform_0, window_bounds = array<i64: 16, 1>}, {pipeline_mode = #tpu.pipeline_mode<synchronous>, transform_indices = @transform_1, window_bounds = array<i64: 64, 128>}, {transform_indices = @transform_2, window_bounds = array<i64: 16, 128>}]} {
    %c0 = arith.constant 0 : index
    %c0_0 = arith.constant 0 : index
    %0 = vector.load %arg1[%c0, %c0_0] : memref<16x1xi32, #tpu.memory_space<vmem>>, vector<16x1xi32>
    %c0_i32 = arith.constant 0 : i32
    %c63_i32 = arith.constant 63 : i32
    %1 = vector.broadcast %c0_i32 : i32 to vector<16x1xi32>
    %2 = arith.maxsi %1, %0 : vector<16x1xi32>
    %3 = vector.broadcast %c63_i32 : i32 to vector<16x1xi32>
    %4 = arith.minsi %3, %2 : vector<16x1xi32>
    %5 = tpu.iota {dimensions = array<i32: 1>} : vector<16x64xi32>
    %6 = vector.broadcast %4 : vector<16x1xi32> to vector<16x64xi32>
    %7 = arith.cmpi eq, %5, %6 : vector<16x64xi32>
    %8 = arith.extui %7 : vector<16x64xi1> to vector<16x64xi32>
    %9 = arith.sitofp %8 : vector<16x64xi32> to vector<16x64xf32>
    %c0_1 = arith.constant 0 : index
    %c0_2 = arith.constant 0 : index
    %10 = vector.load %arg2[%c0_1, %c0_2] : memref<64x128xf32, #tpu.memory_space<vmem>>, vector<64x128xf32>
    %cst = arith.constant dense<0.000000e+00> : vector<16x128xf32>
    %11 = tpu.matmul %9, %10, %cst {dimension_numbers = #tpu.dot_dimension_numbers<[1], [0], [0], [1], [0, 0, 1, 1], [], []>} : vector<16x64xf32>, vector<64x128xf32>, vector<16x128xf32> -> vector<16x128xf32>
    %c0_3 = arith.constant 0 : index
    %c0_4 = arith.constant 0 : index
    %12 = vector.load %arg3[%c0_3, %c0_4] : memref<16x128xf32, #tpu.memory_space<vmem>>, vector<16x128xf32>
    tpu.vector_store %arg3[%c0_3, %c0_4], %11 {strides = array<i32>} : memref<16x128xf32, #tpu.memory_space<vmem>>, vector<16x128xf32>,
    return
  }
  func.func @transform_0(%arg0: i32) -> (i32, i32) {
    %c0_i32 = arith.constant 0 : i32
    %c0_i32_0 = arith.constant 0 : i32
    return %arg0, %c0_i32 : i32, i32
  }
  func.func @transform_1(%arg0: i32) -> (i32, i32) {
    %c0_i32 = arith.constant 0 : i32
    %c0_i32_0 = arith.constant 0 : i32
    %c0_i32_1 = arith.constant 0 : i32
    return %c0_i32, %c0_i32_0 : i32, i32
  }
  func.func @transform_2(%arg0: i32) -> (i32, i32) {
    %c0_i32 = arith.constant 0 : i32
    %c0_i32_0 = arith.constant 0 : i32
    return %arg0, %c0_i32 : i32, i32
  }
}

</mosaic_0001>

<bundles_post_ra>
// kernel: tpu_custom_call.1
= control target key start
LH: loop header
LB: loop body
LE: loop exit
PB: predicated region body
PF: predicated region fallthrough
CT: control target
= control target key end

     0   :  { %7 = vsyncpa [#allocation3], 0  ;;  %s320_s0 = inlined_call_operand.vmem [shape: s32[16,1], index: 0, kind: input, shape index: {}]   ;;  %s321_s1 = inlined_call_operand.hbm [shape: f32[64,128], index: 1, kind: input, shape index: {}]   ;;  %s322_s2 = inlined_call_operand.hbm [shape: f32[16,128], index: 2, kind: output, shape index: {}]  }
   0x1   :  { %8 = vsyncpa [#allocation4], 0  ;;  %s263_s9 = smov [#allocation2]   ;;  %s215_s13 = scalar_lea.hbm %s321_s1, 1024 }
   0x2   :  { %s16_s10 = sshll.u32 %s263_s9, 4  ;;  %p216_p0 = scmp.ne.s32.totalorder %s321_s1, %s215_s13  ;;  %s17_s10 = int_to_ptr.vmem [resolvable:$true] %s16_s10 }
   0x3   :  { %p219_p1 = scmp.lt.u32.totalorder %s215_s13, %s321_s1 }
   0x5   :  { %p221_p2 = pnand %p219_p1, %p216_p0 }
   0x7   :  { %224 = shalt.err (!%p221_p2)
}
   0x8   :  { %s225_s18 = scalar_lea.vmem %s17_s10, 1024  ;;  %p230_p4 = scmp.lt.s32.totalorder %s17_s10, %s17_s10 }
   0x9   :  { %p226_p3 = scmp.ne.s32.totalorder %s17_s10, %s225_s18  ;;  %p231_p5 = scmp.lt.s32.totalorder %s225_s18, %s225_s18 }
   0xb   :  { %p232_p6 = por %p231_p5, %p230_p4 }
   0xd   :  { %p233_p7 = pnand %p232_p6, %p226_p3 }
   0xf   :  { %236 = shalt.err (!%p233_p7)
}
  0x10   :  { %s264_s19 = smov 128   ;;  %s265_s20 = smov 8  }
  0x11   :  { %22 = dma.hbm_to_vmem [thread:$0]  %s321_s1, 1024, %s17_s10, [#allocation3], %s264_s19, %s264_s19, %s265_s20  }
  0x12   :  { %259 = dma.done.wait [#allocation3], 1024  }
  0x13   :  { %260 = vsyncadd [#allocation3], 4294966272  ;;  %v266_v0 = vmov 0   ;;  %v26_v1 = vld [vmem:[%s320_s0] sm:$0xff]  ;;  %v27_v2 = vld [vmem:[%s320_s0 + $0x8] sm:$0xff]  ;;  %v36_v19 = vlaneseq  ;;  %vm58_vm4 = vcmask 523264  }
  0x14   :  { %214 = vset.pattern.permute.xlu0 %v266_v0  ;;  %v50_v3 = vld [vmem:[#allocation2] sm:$0xff]  ;;  %vm28_vm0 = vcmp.gt.s32.totalorder %v26_v1, 0  ;;  %vm30_vm1 = vcmp.gt.s32.totalorder %v27_v2, 0  ;;  %v51_v4 = vld [vmem:[#allocation2 + $0x8] sm:$0xff]  ;;  %v52_v5 = vld [vmem:[#allocation2 + $0x10] sm:$0xff]  ;;  %v267_v22 = vmov 0.0  }
  0x15   :  { %v53_v6 = vld [vmem:[#allocation2 + $0x18] sm:$0xff]  ;;  %v29_v7 = vsel %vm28_vm0, %v26_v1, 0  ;;  %v31_v8 = vsel %vm30_vm1, %v27_v2, 0  ;;  %v192_v9 = vpack.c.bf16 %v51_v4, %v50_v3  ;;  %v54_v11 = vld [vmem:[#allocation2 + $0x20] sm:$0xff]  ;;  %v55_v12 = vld [vmem:[#allocation2 + $0x28] sm:$0xff]  ;;  %v37_v20 = vand.u32 127, %v36_v19 }
  0x16   :  { %v196_v10 = vpack.c.bf16 %v53_v6, %v52_v5  ;;  %vm32_vm2 = vcmp.lt.s32.totalorder %v29_v7, 63  ;;  %vm34_vm3 = vcmp.lt.s32.totalorder %v31_v8, 63  ;;  %v200_v15 = vpack.c.bf16 %v55_v12, %v54_v11  ;;  %v56_v16 = vld [vmem:[#allocation2 + $0x30] sm:$0xff]  ;;  %v57_v17 = vld [vmem:[#allocation2 + $0x38] sm:$0xff]  ;;  %s268_s0 = smov [#allocation5]  }
  0x17   :  { %v33_v13 = vsel %vm32_vm2, %v29_v7, 63  ;;  %193 = vmatprep.subr.bf16.mxu0 %v192_v9  ;;  %v35_v14 = vsel %vm34_vm3, %v31_v8, 63  ;;  %v204_v18 = vpack.c.bf16 %v57_v17, %v56_v16  ;;  %s147_s1 = sshll.u32 %s268_s0, 4  ;;  %s148_s1 = int_to_ptr.vmem [resolvable:$true] %s147_s1 }
  0x18   :  { %39 = vperm.xlu0 %214, %v33_v13   ;;  %195 = vmatpush3.bf16.msra.mxu0 %v192_v9  ;;  %s237_s27 = scalar_lea.vmem %s148_s1, 256  ;;  %p242_p9 = scmp.lt.s32.totalorder %s148_s1, %s148_s1 }
  0x19   :  { %197 = vmatprep.subr.bf16.mxu0 %v196_v10  ;;  %p238_p8 = scmp.ne.s32.totalorder %s148_s1, %s237_s27  ;;  %p243_p10 = scmp.lt.s32.totalorder %s237_s27, %s237_s27 }
  0x1b   :  { %p244_p11 = por %p243_p10, %p242_p9 }
  0x1c   :  { %42 = vperm.xlu0 %214, %v35_v14   ;;  %199 = vmatpush3.bf16.msra.mxu0 %v196_v10 }
  0x1d   :  { %201 = vmatprep.subr.bf16.mxu0 %v200_v15  ;;  %p245_p12 = pnand %p244_p11, %p238_p8 }
  0x20   :  { %203 = vmatpush3.bf16.msra.mxu0 %v200_v15 }
  0x21   :  { %205 = vmatprep.subr.bf16.mxu0 %v204_v18 }
  0x24   :  { %207 = vmatpush3.bf16.msra.mxu0 %v204_v18 }
  0x97   :  { %v40_v21 = vpop.permute.xlu0 %39 }
  0x98   :  { %vm44_vm5 = vcmp.eq.s32.totalorder %v37_v20, %v40_v21 }
  0x99   :  { %v159_v23 = vsel %vm44_vm5, 1.0, %v267_v22 }
  0x9a   :  { %189 = vmatprep.mubr.msk.f32.mxu0 %vm58_vm4, %v159_v23 }
  0x9b   :  { %v43_v24 = vpop.permute.xlu0 %42 }
  0x9c   :  { %vm45_vm6 = vcmp.eq.s32.totalorder %v37_v20, %v43_v24 }
  0x9d   :  { %v160_v25 = vsel %vm45_vm6, 1.0, %v267_v22 }
  0x9e   :  { %190 = vmatmul.mubr.msk.f32.vlgmr.msra.gmra.mrb[0].mxu0 %vm58_vm4, %v160_v25 }
 0x171   :  { %v191_v26 = vpop.f32.mrb[0].mxu0 }
 0x172   :  { %141 = vst [vmem:[#allocation5 + $0x8] sm:$0xff] %v191_v26  ;;  %v131_v27 = vpop.f32.mrb[1].mxu0 }
 0x173   :  { %140 = vst [vmem:[#allocation5] sm:$0xff] %v131_v27 }
 0x174   :  { %248 = shalt.err (!%p245_p12)
}
 0x175   :  { %s249_s30 = scalar_lea.hbm %s322_s2, 256 }
 0x176   :  { %p250_p13 = scmp.ne.s32.totalorder %s322_s2, %s249_s30  ;;  %p253_p0 = scmp.lt.u32.totalorder %s249_s30, %s322_s2 }
 0x178   :  { %p255_p1 = pnand %p253_p0, %p250_p13 }
 0x17a   :  { %258 = shalt.err (!%p255_p1)
}
 0x17b   :  { %153 = dma.vmem_to_hbm [thread:$0]  %s148_s1, 256, %s322_s2, [#allocation4], %s264_s19, %s264_s19, %s265_s20  }
 0x17c   :  { %261 = dma.done.wait [#allocation4], 256  }
 0x17d   :  { %262 = vsyncadd [#allocation4], 4294967040 }
 0x17e   :  { %157 = vsyncpa [#allocation3], 1 }
 0x17f   :  { %158 = vsyncpa [#allocation4], 1 }

</bundles_post_ra>
